<compile_context>
chip_gen: v7x
topology: tpu7x:2x2x1
jax: 0.10.0
libtpu: 0.0.40
codegen_flags: <defaults>
</compile_context>

<pallas_src>
import functools

import jax
import jax.numpy as jnp
import numpy as np
from jax.experimental import pallas as pl
from jax.experimental.pallas import tpu as pltpu


# ----------------------------- Pallas kernel --------------------------------

def mha_rope_head_kernel(x_ref, w_ref, b_ref, wout_ref, bout_ref,
                         cos_ref, sin_ref, o_ref, acc_ref, *, matmul_dtype):
    """One (batch, head) grid step: project, RoPE, attention, out-proj slice."""
    h = pl.program_id(1)

    cast = (lambda t: t) if matmul_dtype is None else (lambda t: t.astype(matmul_dtype))

    x = cast(x_ref[0])                                        # (S, D)

    def proj(i):
        # Per-head projection: (S, D) @ (D, hd) + (1, hd), f32 accumulation.
        w = cast(w_ref[i, 0])
        return jnp.dot(x, w, preferred_element_type=jnp.float32) + b_ref[i, 0]

    q, q_rot = proj(0), proj(1)       # q-side params already carry 1/sqrt(hd)
    k, k_rot = proj(2), proj(3)
    v = proj(4)

    cos = cos_ref[...]                                        # (S, hd)
    sin = sin_ref[...]
    q = q * cos + q_rot * sin                                 # RoPE (rotation pre-folded)
    k = k * cos + k_rot * sin

    # QK^T: contract the last dims directly — no explicit k.T transpose.
    scores = jax.lax.dot_general(cast(q), cast(k), (((1,), (1,)), ((), ())),
                                 preferred_element_type=jnp.float32)   # (S, S)
    scores = scores - jnp.max(scores, axis=-1, keepdims=True)
    p = jnp.exp(scores)
    denom = jnp.sum(p, axis=-1, keepdims=True)
    p = p * pl.reciprocal(denom, approx=True)                 # EUP, not an (S,S) divide

    attn = jnp.dot(cast(p), cast(v), preferred_element_type=jnp.float32)     # (S, hd)
    contrib = jnp.dot(cast(attn), cast(wout_ref[0]),
                      preferred_element_type=jnp.float32)                    # (S, D)

    @pl.when(h == 0)
    def _init():
        acc_ref[...] = jnp.broadcast_to(bout_ref[...], acc_ref.shape)

    acc_ref[...] += contrib

    @pl.when(h == pl.num_programs(1) - 1)
    def _store():
        o_ref[0] = acc_ref[...].astype(o_ref.dtype)


# ----------------------------- Host-side glue --------------------------------

def get_rotary_embedding(seq_len, dim):
    inv_freq = 1.0 / (10000.0 ** (jnp.arange(0, dim, 2, dtype=jnp.float32) / dim))
    t = jnp.arange(seq_len, dtype=jnp.float32)
    freqs = jnp.einsum("i,j->ij", t, inv_freq)
    emb = jnp.concatenate((freqs, freqs), axis=-1)            # (S, dim)
    return jnp.cos(emb), jnp.sin(emb)


def make_rotate_every_two_matrix(dim):
    # rot = x @ R  with rot[2i] = -x[2i+1], rot[2i+1] = x[2i]  (exact signed perm)
    R = np.zeros((dim, dim), dtype=np.float32)
    for i in range(dim // 2):
        R[2 * i + 1, 2 * i] = -1.0
        R[2 * i, 2 * i + 1] = 1.0
    return jnp.asarray(R)


def mha_rope_pallas(x, wqkv, bqkv, wout, bout, num_heads, *, matmul_dtype=None):
    """x: (B,S,D); wqkv: (D,3D) (in,out); bqkv: (3D,); wout: (D,D); bout: (D,)."""
    B, S, D = x.shape
    assert D % num_heads == 0
    H = num_heads
    hd = D // H
    scale = 1.0 / (hd ** 0.5)

    f32 = jnp.float32
    wqkv = wqkv.astype(f32)
    bqkv = bqkv.astype(f32)
    wout = wout.astype(f32)
    bout = bout.astype(f32)

    # Head-major weight layout so per-head blocks are full trailing-dim slabs.
    def split_heads(w_cols, b_cols):
        w = w_cols.reshape(D, H, hd).transpose(1, 0, 2)       # (H, D, hd)
        b = b_cols.reshape(H, 1, hd)                          # (H, 1, hd)
        return w, b

    wq, bq = split_heads(wqkv[:, :D], bqkv[:D])
    wk, bk = split_heads(wqkv[:, D:2 * D], bqkv[D:2 * D])
    wv, bv = split_heads(wqkv[:, 2 * D:], bqkv[2 * D:])

    # Fold rotate_every_two into the projection weights/biases (host-side, exact).
    R = make_rotate_every_two_matrix(hd)                      # (hd, hd)
    wq_rot, bq_rot = wq @ R, bq @ R
    wk_rot, bk_rot = wk @ R, bk @ R

    # Fold the 1/sqrt(head_dim) attention scale into the q-side parameters.
    wq, wq_rot, bq, bq_rot = wq * scale, wq_rot * scale, bq * scale, bq_rot * scale

    w_heads = jnp.stack([wq, wq_rot, wk, wk_rot, wv], axis=0)   # (5, H, D, hd)
    b_heads = jnp.stack([bq, bq_rot, bk, bk_rot, bv], axis=0)   # (5, H, 1, hd)
    wout_heads = wout.reshape(H, hd, D)                         # (H, hd, D)
    bout_row = bout.reshape(1, D)                               # (1, D)

    cos, sin = get_rotary_embedding(S, hd)                      # (S, hd) each

    # VMEM budget: double-buffered blocks + accumulator, clamped to the default.
    blk_elems = (S * D) + (5 * D * hd) + (5 * hd) + (hd * D) + D + (2 * S * hd) + (S * D)
    vmem_limit = int(min(max(4 * blk_elems * 4 + S * D * 4, 16 * 2 ** 20), 32 * 2 ** 20))

    kernel = functools.partial(mha_rope_head_kernel, matmul_dtype=matmul_dtype)

    return pl.pallas_call(
        kernel,
        out_shape=jax.ShapeDtypeStruct((B, S, D), x.dtype),
        grid_spec=pltpu.PrefetchScalarGridSpec(
            num_scalar_prefetch=0,
            grid=(B, H),                       # heads innermost: output-accumulation axis
            in_specs=[
                pl.BlockSpec((1, S, D), lambda b, h: (b, 0, 0)),          # x (per batch)
                pl.BlockSpec((5, 1, D, hd), lambda b, h: (0, h, 0, 0)),   # q/q_rot/k/k_rot/v weights
                pl.BlockSpec((5, 1, 1, hd), lambda b, h: (0, h, 0, 0)),   # matching biases
                pl.BlockSpec((1, hd, D), lambda b, h: (h, 0, 0)),         # W_out row-slice
                pl.BlockSpec((1, D), lambda b, h: (0, 0)),                # b_out
                pl.BlockSpec((S, hd), lambda b, h: (0, 0)),               # cos
                pl.BlockSpec((S, hd), lambda b, h: (0, 0)),               # sin
            ],
            out_specs=pl.BlockSpec((1, S, D), lambda b, h: (b, 0, 0)),    # resident over h
            scratch_shapes=[pltpu.VMEM((S, D), jnp.float32)],             # out-proj accumulator
        ),
        compiler_params=pltpu.CompilerParams(
            dimension_semantics=("parallel", "arbitrary"),
            vmem_limit_bytes=vmem_limit),
    )(x, w_heads, b_heads, wout_heads, bout_row, cos, sin)


# ----------------------------- Pure-JAX reference ----------------------------

def ref_forward(x, wqkv, bqkv, wout, bout, cos_emb, sin_emb, num_heads, head_dim):
    """Mirrors the PyTorch module exactly."""
    B, S, D = x.shape
    qkv = x @ wqkv + bqkv
    qkv = qkv.reshape(B, S, 3, num_heads, head_dim).transpose(2, 0, 3, 1, 4)
    q, k, v = qkv[0], qkv[1], qkv[2]                          # (B, H, S, hd)

    def rotate_every_two(t):
        x1 = t[..., ::2]
        x2 = t[..., 1::2]
        return jnp.stack((-x2, x1), axis=-1).reshape(t.shape)

    cos = cos_emb[None, None]
    sin = sin_emb[None, None]
    q = q * cos + rotate_every_two(q) * sin
    k = k * cos + rotate_every_two(k) * sin

    scores = jnp.einsum("bhqd,bhkd->bhqk", q, k) / (head_dim ** 0.5)
    probs = jax.nn.softmax(scores, axis=-1)
    out = jnp.einsum("bhqk,bhkd->bhqd", probs, v)
    out = out.transpose(0, 2, 1, 3).reshape(B, S, D)
    return out @ wout + bout


if __name__ == "__main__":
    # Small, lane-dense shapes consistent with the module (d_model multiple of 128).
    batch, seq_len, d_model, num_heads = 2, 16, 128, 4
    head_dim = d_model // num_heads

    key = jax.random.PRNGKey(0)
    kx, kw1, kb1, kw2, kb2 = jax.random.split(key, 5)

    x = jax.random.normal(kx, (batch, seq_len, d_model), dtype=jnp.float32)

    # nn.Linear params, stored pre-transposed as (in_features, out_features).
    wqkv = jax.random.normal(kw1, (d_model, 3 * d_model), dtype=jnp.float32) * 0.05
    bqkv = jax.random.normal(kb1, (3 * d_model,), dtype=jnp.float32) * 0.05
    wout = jax.random.normal(kw2, (d_model, d_model), dtype=jnp.float32) * 0.05
    bout = jax.random.normal(kb2, (d_model,), dtype=jnp.float32) * 0.05

    out = mha_rope_pallas(x, wqkv, bqkv, wout, bout, num_heads)  # f32 path
    out = jax.block_until_ready(out)

    cos_emb, sin_emb = get_rotary_embedding(seq_len, head_dim)
    expected = ref_forward(x, wqkv, bqkv, wout, bout, cos_emb, sin_emb,
                           num_heads, head_dim)
    # Tolerance slightly relaxed because the softmax denominator uses the EUP
    # approximate reciprocal (pl.reciprocal(approx=True)); layout/matmul errors
    # would be orders of magnitude larger than this threshold.
    np.testing.assert_allclose(np.asarray(out), np.asarray(expected),
                               rtol=2e-3, atol=2e-3)
    print("KERNEL_OK")
</pallas_src>

<mosaic_0001>
module attributes {stable_mosaic.version = 11 : i64} {
  func.func @mha_rope_head_kernel(%arg0: i32, %arg1: i32, %arg2: memref<1x16x128xf32, #tpu.memory_space<vmem>>, %arg3: memref<5x1x128x32xf32, #tpu.memory_space<vmem>>, %arg4: memref<5x1x1x32xf32, #tpu.memory_space<vmem>>, %arg5: memref<1x32x128xf32, #tpu.memory_space<vmem>>, %arg6: memref<1x128xf32, #tpu.memory_space<vmem>>, %arg7: memref<16x32xf32, #tpu.memory_space<vmem>>, %arg8: memref<16x32xf32, #tpu.memory_space<vmem>>, %arg9: memref<1x16x128xf32, #tpu.memory_space<vmem>>, %arg10: memref<16x128xf32, #tpu.memory_space<vmem>>) attributes {dimension_semantics = [#tpu.dimension_semantics<parallel>, #tpu.dimension_semantics<arbitrary>], iteration_bounds = array<i64: 2, 4>, scalar_prefetch = 0 : i64, scratch_operands = 1 : i64, tpu.core_type = #tpu.core_type<tc>, window_params = [{transform_indices = @transform_0, window_bounds = array<i64: 1, 16, 128>}, {transform_indices = @transform_1, window_bounds = array<i64: 5, 1, 128, 32>}, {transform_indices = @transform_2, window_bounds = array<i64: 5, 1, 1, 32>}, {transform_indices = @transform_3, window_bounds = array<i64: 1, 32, 128>}, {pipeline_mode = #tpu.pipeline_mode<synchronous>, transform_indices = @transform_4, window_bounds = array<i64: 1, 128>}, {pipeline_mode = #tpu.pipeline_mode<synchronous>, transform_indices = @transform_5, window_bounds = array<i64: 16, 32>}, {pipeline_mode = #tpu.pipeline_mode<synchronous>, transform_indices = @transform_6, window_bounds = array<i64: 16, 32>}, {transform_indices = @transform_7, window_bounds = array<i64: 1, 16, 128>}]} {
    %c0 = arith.constant 0 : index
    %c0_0 = arith.constant 0 : index
    %c0_1 = arith.constant 0 : index
    %0 = vector.load %arg2[%c0, %c0_0, %c0_1] : memref<1x16x128xf32, #tpu.memory_space<vmem>>, vector<1x16x128xf32>
    %1 = vector.shape_cast %0 : vector<1x16x128xf32> to vector<16x128xf32>
    %c0_2 = arith.constant 0 : index
    %c0_3 = arith.constant 0 : index
    %c0_4 = arith.constant 0 : index
    %c0_5 = arith.constant 0 : index
    %2 = vector.load %arg3[%c0_2, %c0_3, %c0_4, %c0_5] : memref<5x1x128x32xf32, #tpu.memory_space<vmem>>, vector<1x1x128x32xf32>
    %3 = vector.shape_cast %2 : vector<1x1x128x32xf32> to vector<128x32xf32>
    %cst = arith.constant dense<0.000000e+00> : vector<16x32xf32>
    %4 = tpu.matmul %1, %3, %cst {dimension_numbers = #tpu.dot_dimension_numbers<[1], [0], [0], [1], [0, 0, 1, 1], [], []>} : vector<16x128xf32>, vector<128x32xf32>, vector<16x32xf32> -> vector<16x32xf32>
    %c0_6 = arith.constant 0 : index
    %c0_7 = arith.constant 0 : index
    %c0_8 = arith.constant 0 : index
    %c0_9 = arith.constant 0 : index
    %5 = vector.load %arg4[%c0_6, %c0_7, %c0_8, %c0_9] : memref<5x1x1x32xf32, #tpu.memory_space<vmem>>, vector<1x1x1x32xf32>
    %6 = vector.shape_cast %5 : vector<1x1x1x32xf32> to vector<1x32xf32>
    %7 = vector.broadcast %6 : vector<1x32xf32> to vector<16x32xf32>
    %8 = arith.addf %4, %7 : vector<16x32xf32>
    %c1 = arith.constant 1 : index
    %c0_10 = arith.constant 0 : index
    %c0_11 = arith.constant 0 : index
    %c0_12 = arith.constant 0 : index
    %9 = vector.load %arg3[%c1, %c0_10, %c0_11, %c0_12] : memref<5x1x128x32xf32, #tpu.memory_space<vmem>>, vector<1x1x128x32xf32>
    %10 = vector.shape_cast %9 : vector<1x1x128x32xf32> to vector<128x32xf32>
    %cst_13 = arith.constant dense<0.000000e+00> : vector<16x32xf32>
    %11 = tpu.matmul %1, %10, %cst_13 {dimension_numbers = #tpu.dot_dimension_numbers<[1], [0], [0], [1], [0, 0, 1, 1], [], []>} : vector<16x128xf32>, vector<128x32xf32>, vector<16x32xf32> -> vector<16x32xf32>
    %c1_14 = arith.constant 1 : index
    %c0_15 = arith.constant 0 : index
    %c0_16 = arith.constant 0 : index
    %c0_17 = arith.constant 0 : index
    %12 = vector.load %arg4[%c1_14, %c0_15, %c0_16, %c0_17] : memref<5x1x1x32xf32, #tpu.memory_space<vmem>>, vector<1x1x1x32xf32>
    %13 = vector.shape_cast %12 : vector<1x1x1x32xf32> to vector<1x32xf32>
    %14 = vector.broadcast %13 : vector<1x32xf32> to vector<16x32xf32>
    %15 = arith.addf %11, %14 : vector<16x32xf32>
    %c2 = arith.constant 2 : index
    %c0_18 = arith.constant 0 : index
    %c0_19 = arith.constant 0 : index
    %c0_20 = arith.constant 0 : index
    %16 = vector.load %arg3[%c2, %c0_18, %c0_19, %c0_20] : memref<5x1x128x32xf32, #tpu.memory_space<vmem>>, vector<1x1x128x32xf32>
    %17 = vector.shape_cast %16 : vector<1x1x128x32xf32> to vector<128x32xf32>
    %cst_21 = arith.constant dense<0.000000e+00> : vector<16x32xf32>
    %18 = tpu.matmul %1, %17, %cst_21 {dimension_numbers = #tpu.dot_dimension_numbers<[1], [0], [0], [1], [0, 0, 1, 1], [], []>} : vector<16x128xf32>, vector<128x32xf32>, vector<16x32xf32> -> vector<16x32xf32>
    %c2_22 = arith.constant 2 : index
    %c0_23 = arith.constant 0 : index
    %c0_24 = arith.constant 0 : index
    %c0_25 = arith.constant 0 : index
    %19 = vector.load %arg4[%c2_22, %c0_23, %c0_24, %c0_25] : memref<5x1x1x32xf32, #tpu.memory_space<vmem>>, vector<1x1x1x32xf32>
    %20 = vector.shape_cast %19 : vector<1x1x1x32xf32> to vector<1x32xf32>
    %21 = vector.broadcast %20 : vector<1x32xf32> to vector<16x32xf32>
    %22 = arith.addf %18, %21 : vector<16x32xf32>
    %c3 = arith.constant 3 : index
    %c0_26 = arith.constant 0 : index
    %c0_27 = arith.constant 0 : index
    %c0_28 = arith.constant 0 : index
    %23 = vector.load %arg3[%c3, %c0_26, %c0_27, %c0_28] : memref<5x1x128x32xf32, #tpu.memory_space<vmem>>, vector<1x1x128x32xf32>
    %24 = vector.shape_cast %23 : vector<1x1x128x32xf32> to vector<128x32xf32>
    %cst_29 = arith.constant dense<0.000000e+00> : vector<16x32xf32>
    %25 = tpu.matmul %1, %24, %cst_29 {dimension_numbers = #tpu.dot_dimension_numbers<[1], [0], [0], [1], [0, 0, 1, 1], [], []>} : vector<16x128xf32>, vector<128x32xf32>, vector<16x32xf32> -> vector<16x32xf32>
    %c3_30 = arith.constant 3 : index
    %c0_31 = arith.constant 0 : index
    %c0_32 = arith.constant 0 : index
    %c0_33 = arith.constant 0 : index
    %26 = vector.load %arg4[%c3_30, %c0_31, %c0_32, %c0_33] : memref<5x1x1x32xf32, #tpu.memory_space<vmem>>, vector<1x1x1x32xf32>
    %27 = vector.shape_cast %26 : vector<1x1x1x32xf32> to vector<1x32xf32>
    %28 = vector.broadcast %27 : vector<1x32xf32> to vector<16x32xf32>
    %29 = arith.addf %25, %28 : vector<16x32xf32>
    %c4 = arith.constant 4 : index
    %c0_34 = arith.constant 0 : index
    %c0_35 = arith.constant 0 : index
    %c0_36 = arith.constant 0 : index
    %30 = vector.load %arg3[%c4, %c0_34, %c0_35, %c0_36] : memref<5x1x128x32xf32, #tpu.memory_space<vmem>>, vector<1x1x128x32xf32>
    %31 = vector.shape_cast %30 : vector<1x1x128x32xf32> to vector<128x32xf32>
    %cst_37 = arith.constant dense<0.000000e+00> : vector<16x32xf32>
    %32 = tpu.matmul %1, %31, %cst_37 {dimension_numbers = #tpu.dot_dimension_numbers<[1], [0], [0], [1], [0, 0, 1, 1], [], []>} : vector<16x128xf32>, vector<128x32xf32>, vector<16x32xf32> -> vector<16x32xf32>
    %c4_38 = arith.constant 4 : index
    %c0_39 = arith.constant 0 : index
    %c0_40 = arith.constant 0 : index
    %c0_41 = arith.constant 0 : index
    %33 = vector.load %arg4[%c4_38, %c0_39, %c0_40, %c0_41] : memref<5x1x1x32xf32, #tpu.memory_space<vmem>>, vector<1x1x1x32xf32>
    %34 = vector.shape_cast %33 : vector<1x1x1x32xf32> to vector<1x32xf32>
    %35 = vector.broadcast %34 : vector<1x32xf32> to vector<16x32xf32>
    %36 = arith.addf %32, %35 : vector<16x32xf32>
    %c0_42 = arith.constant 0 : index
    %c0_43 = arith.constant 0 : index
    %37 = vector.load %arg7[%c0_42, %c0_43] : memref<16x32xf32, #tpu.memory_space<vmem>>, vector<16x32xf32>
    %c0_44 = arith.constant 0 : index
    %c0_45 = arith.constant 0 : index
    %38 = vector.load %arg8[%c0_44, %c0_45] : memref<16x32xf32, #tpu.memory_space<vmem>>, vector<16x32xf32>
    %39 = arith.mulf %8, %37 : vector<16x32xf32>
    %40 = arith.mulf %15, %38 : vector<16x32xf32>
    %41 = arith.addf %39, %40 : vector<16x32xf32>
    %42 = arith.mulf %22, %37 : vector<16x32xf32>
    %43 = arith.mulf %29, %38 : vector<16x32xf32>
    %44 = arith.addf %42, %43 : vector<16x32xf32>
    %cst_46 = arith.constant dense<0.000000e+00> : vector<16x16xf32>
    %45 = tpu.matmul %41, %44, %cst_46 {dimension_numbers = #tpu.dot_dimension_numbers<[1], [1], [0], [0], [0, 0, 1, 0], [], []>} : vector<16x32xf32>, vector<16x32xf32>, vector<16x16xf32> -> vector<16x16xf32>
    %cst_47 = arith.constant dense<0xFF800000> : vector<16xf32>
    %46 = vector.multi_reduction <maximumf>, %45, %cst_47 [1] : vector<16x16xf32> to vector<16xf32>
    %47 = vector.shape_cast %46 : vector<16xf32> to vector<16x1xf32>
    %48 = vector.broadcast %47 : vector<16x1xf32> to vector<16x16xf32>
    %49 = arith.subf %45, %48 : vector<16x16xf32>
    %50 = math.exp %49 : vector<16x16xf32>
    %cst_48 = arith.constant dense<0.000000e+00> : vector<16xf32>
    %51 = vector.multi_reduction <add>, %50, %cst_48 [1] : vector<16x16xf32> to vector<16xf32>
    %52 = vector.shape_cast %51 : vector<16xf32> to vector<16x1xf32>
    %53 = tpu.reciprocal %52 {approx = true} : vector<16x1xf32> -> vector<16x1xf32>
    %54 = vector.broadcast %53 : vector<16x1xf32> to vector<16x16xf32>
    %55 = arith.mulf %50, %54 : vector<16x16xf32>
    %cst_49 = arith.constant dense<0.000000e+00> : vector<16x32xf32>
    %56 = tpu.matmul %55, %36, %cst_49 {dimension_numbers = #tpu.dot_dimension_numbers<[1], [0], [0], [1], [0, 0, 1, 1], [], []>} : vector<16x16xf32>, vector<16x32xf32>, vector<16x32xf32> -> vector<16x32xf32>
    %c0_50 = arith.constant 0 : index
    %c0_51 = arith.constant 0 : index
    %c0_52 = arith.constant 0 : index
    %57 = vector.load %arg5[%c0_50, %c0_51, %c0_52] : memref<1x32x128xf32, #tpu.memory_space<vmem>>, vector<1x32x128xf32>
    %58 = vector.shape_cast %57 : vector<1x32x128xf32> to vector<32x128xf32>
    %cst_53 = arith.constant dense<0.000000e+00> : vector<16x128xf32>
    %59 = tpu.matmul %56, %58, %cst_53 {dimension_numbers = #tpu.dot_dimension_numbers<[1], [0], [0], [1], [0, 0, 1, 1], [], []>} : vector<16x32xf32>, vector<32x128xf32>, vector<16x128xf32> -> vector<16x128xf32>
    %c0_i32 = arith.constant 0 : i32
    %60 = arith.cmpi eq, %arg1, %c0_i32 : i32
    %61 = arith.extui %60 : i1 to i32
    %c0_i32_54 = arith.constant 0 : i32
    %62 = arith.cmpi ne, %61, %c0_i32_54 : i32
    scf.if %62 {
      %c0_60 = arith.constant 0 : index
      %c0_61 = arith.constant 0 : index
      %69 = vector.load %arg6[%c0_60, %c0_61] : memref<1x128xf32, #tpu.memory_space<vmem>>, vector<1x128xf32>
      %70 = vector.shape_cast %69 : vector<1x128xf32> to vector<1x128xf32>
      %71 = vector.broadcast %70 : vector<1x128xf32> to vector<16x128xf32>
      %c0_62 = arith.constant 0 : index
      %c0_63 = arith.constant 0 : index
      %72 = vector.load %arg10[%c0_62, %c0_63] : memref<16x128xf32, #tpu.memory_space<vmem>>, vector<16x128xf32>
      tpu.vector_store %arg10[%c0_62, %c0_63], %71 {strides = array<i32>} : memref<16x128xf32, #tpu.memory_space<vmem>>, vector<16x128xf32>,
    } else {
    }
    %c0_55 = arith.constant 0 : index
    %c0_56 = arith.constant 0 : index
    %63 = vector.load %arg10[%c0_55, %c0_56] : memref<16x128xf32, #tpu.memory_space<vmem>>, vector<16x128xf32>
    %64 = arith.addf %63, %59 : vector<16x128xf32>
    %c0_57 = arith.constant 0 : index
    %c0_58 = arith.constant 0 : index
    %65 = vector.load %arg10[%c0_57, %c0_58] : memref<16x128xf32, #tpu.memory_space<vmem>>, vector<16x128xf32>
    tpu.vector_store %arg10[%c0_57, %c0_58], %64 {strides = array<i32>} : memref<16x128xf32, #tpu.memory_space<vmem>>, vector<16x128xf32>,
    %c3_i32 = arith.constant 3 : i32
    %66 = arith.cmpi eq, %arg1, %c3_i32 : i32
    %67 = arith.extui %66 : i1 to i32
    %c0_i32_59 = arith.constant 0 : i32
    %68 = arith.cmpi ne, %67, %c0_i32_59 : i32
    scf.if %68 {
      %c0_60 = arith.constant 0 : index
      %c0_61 = arith.constant 0 : index
      %69 = vector.load %arg10[%c0_60, %c0_61] : memref<16x128xf32, #tpu.memory_space<vmem>>, vector<16x128xf32>
      %c0_62 = arith.constant 0 : index
      %c0_63 = arith.constant 0 : index
      %c0_64 = arith.constant 0 : index
      %70 = vector.load %arg9[%c0_62, %c0_63, %c0_64] : memref<1x16x128xf32, #tpu.memory_space<vmem>>, vector<1x16x128xf32>
      %71 = vector.shape_cast %70 : vector<1x16x128xf32> to vector<16x128xf32>
      %72 = vector.shape_cast %69 : vector<16x128xf32> to vector<1x16x128xf32>
      tpu.vector_store %arg9[%c0_62, %c0_63, %c0_64], %72 {strides = array<i32>} : memref<1x16x128xf32, #tpu.memory_space<vmem>>, vector<1x16x128xf32>,
    } else {
    }
    return
  }
  func.func @transform_0(%arg0: i32, %arg1: i32) -> (i32, i32, i32) {
    %c0_i32 = arith.constant 0 : i32
    %c0_i32_0 = arith.constant 0 : i32
    %c0_i32_1 = arith.constant 0 : i32
    return %arg0, %c0_i32, %c0_i32_0 : i32, i32, i32
  }
  func.func @transform_1(%arg0: i32, %arg1: i32) -> (i32, i32, i32, i32) {
    %c0_i32 = arith.constant 0 : i32
    %c0_i32_0 = arith.constant 0 : i32
    %c0_i32_1 = arith.constant 0 : i32
    %c0_i32_2 = arith.constant 0 : i32
    return %c0_i32, %arg1, %c0_i32_0, %c0_i32_1 : i32, i32, i32, i32
  }
  func.func @transform_2(%arg0: i32, %arg1: i32) -> (i32, i32, i32, i32) {
    %c0_i32 = arith.constant 0 : i32
    %c0_i32_0 = arith.constant 0 : i32
    %c0_i32_1 = arith.constant 0 : i32
    %c0_i32_2 = arith.constant 0 : i32
    return %c0_i32, %arg1, %c0_i32_0, %c0_i32_1 : i32, i32, i32, i32
  }
  func.func @transform_3(%arg0: i32, %arg1: i32) -> (i32, i32, i32) {
    %c0_i32 = arith.constant 0 : i32
    %c0_i32_0 = arith.constant 0 : i32
    %c0_i32_1 = arith.constant 0 : i32
    return %arg1, %c0_i32, %c0_i32_0 : i32, i32, i32
  }
  func.func @transform_4(%arg0: i32, %arg1: i32) -> (i32, i32) {
    %c0_i32 = arith.constant 0 : i32
    %c0_i32_0 = arith.constant 0 : i32
    %c0_i32_1 = arith.constant 0 : i32
    return %c0_i32, %c0_i32_0 : i32, i32
  }
  func.func @transform_5(%arg0: i32, %arg1: i32) -> (i32, i32) {
    %c0_i32 = arith.constant 0 : i32
    %c0_i32_0 = arith.constant 0 : i32
    %c0_i32_1 = arith.constant 0 : i32
    return %c0_i32, %c0_i32_0 : i32, i32
  }
  func.func @transform_6(%arg0: i32, %arg1: i32) -> (i32, i32) {
    %c0_i32 = arith.constant 0 : i32
    %c0_i32_0 = arith.constant 0 : i32
    %c0_i32_1 = arith.constant 0 : i32
    return %c0_i32, %c0_i32_0 : i32, i32
  }
  func.func @transform_7(%arg0: i32, %arg1: i32) -> (i32, i32, i32) {
    %c0_i32 = arith.constant 0 : i32
    %c0_i32_0 = arith.constant 0 : i32
    %c0_i32_1 = arith.constant 0 : i32
    return %arg0, %c0_i32, %c0_i32_0 : i32, i32, i32
  }
}

</mosaic_0001>

<bundles_post_ra>
// kernel: tpu_custom_call.1
= control target key start
LH: loop header
LB: loop body
LE: loop exit
PB: predicated region body
PF: predicated region fallthrough
CT: control target
= control target key end

     0   :  { %s3041_s0 = inlined_call_operand.vmem [shape: f32[2,16,128], index: 0, kind: input, shape index: {}]   ;;  %s3042_s1 = inlined_call_operand.vmem [shape: f32[5,4,128,32], index: 1, kind: input, shape index: {}]   ;;  %s3043_s2 = inlined_call_operand.vmem [shape: f32[5,4,1,32], index: 2, kind: input, shape index: {}]   ;;  %s3044_s3 = inlined_call_operand.vmem [shape: f32[4,32,128], index: 3, kind: input, shape index: {}]   ;;  %s3045_s4 = inlined_call_operand.vmem [shape: f32[1,128], index: 4, kind: input, shape index: {}]   ;;  %s3046_s5 = inlined_call_operand.vmem [shape: f32[16,32], index: 5, kind: input, shape index: {}]   ;;  %s3047_s6 = inlined_call_operand.vmem [shape: f32[16,32], index: 6, kind: input, shape index: {}]   ;;  %s3048_s7 = inlined_call_operand.hbm [shape: f32[2,16,128], index: 7, kind: output, shape index: {}]  }
   0x1   :  { %3051 = sst [smem:[#allocation9_spill]] %s3041_s0 }
   0x2   :  { %3052 = sst [smem:[#allocation10_spill]] %s3042_s1 }
   0x3   :  { %12 = vsyncpa [#allocation6], 0 }
   0x4   :  { %14 = vsyncpa [#allocation6 + $0x1], 0  ;;  %s2545_s24 = smov 0   ;;  %s2547_s25 = smov 0  }
   0x5   :  { %s2549_s26 = smov 0   ;;  %s2551_s27 = smov 0  }
   0x6   :  { %s2553_s28 = smov 0   ;;  %s2555_s29 = smov 0  }
   0x7   :  { %s2557_s30 = smov 0   ;;  %s2559_s8 = smov 0  }
   0x8   :  { %s2561_s9 = smov 0   ;;  %s2563_s10 = smov 0  }
   0x9 LB: > { %s1702_s11 = sadd.s32 4294967295, %s2500_s10   ;;  %s1703_s12 = sadd.s32 4294967294, %s2500_s10   ;;  %s2500_s10 = sphi %s2563_s10, %s20_s10   ;;  %s2496_s9 = sphi %s2561_s9, %s3069_s9   ;;  %s2492_s8 = sphi %s2559_s8, %s3068_s8   ;;  %s2488_s30 = sphi %s2557_s30, %s3067_s30   ;;  %s2484_s29 = sphi %s2555_s29, %s3066_s29   ;;  %s2480_s28 = sphi %s2553_s28, %s3065_s28   ;;  %s2476_s27 = sphi %s2551_s27, %s3064_s27   ;;  %s2472_s26 = sphi %s2549_s26, %s3063_s26   ;;  %s2468_s25 = sphi %s2547_s25, %s3062_s25   ;;  %s2464_s24 = sphi %s2545_s24, %s3061_s24  }
   0xa   : > { %s29_s13 = sadd.s32 1, %s2492_s8  ;;  %s32_s14 = sadd.s32 1, %s2496_s9 }
   0xb   : > { %p30_p0 = scmp.ge.s32.totalorder %s29_s13, 4  ;;  %s65_s15 = sadd.s32 1, %s2480_s28 }
   0xc   : > { %p72_p1 = scmp.ne.s32.totalorder %s2480_s28, %s2476_s27  ;;  %p73_p2 = scmp.eq.s32.totalorder %s2500_s10, 0 }
   0xd   : > { %s3071_s13 = smov (%p30_p0, %s29_s13), 0  ;;  %s3073_s14 = smov (!%p30_p0, %s32_s14), %s2496_s9 }
   0xe   : > { %s62_s16 = ssub.s32 %s2492_s8, %s3071_s13  ;;  %p2608_p3 = por %p73_p2, %p72_p1 }
   0xf   : > { %p34_p4 = scmp.ge.s32.totalorder %s3073_s14, 2  ;;  %p63_p5 = scmp.eq.s32.totalorder %s62_s16, 0 }
  0x10   : > { %s206_s18 = sadd.s32 1, %s2472_s26  ;;  %p216_p6 = scmp.ne.s32.totalorder %s2472_s26, %s2468_s25 }
  0x11   : > { %s3075_s14 = smov (%p34_p4, %s3073_s14), 0  ;;  %p217_p7 = scmp.eq.s32.totalorder %s1702_s11, 7 }
  0x12   : > { %3054 = sst [smem:[#allocation8_spill]] %s3075_s14  ;;  %s203_s20 = ssub.s32 %s2496_s9, %s3075_s14 }
  0x13   : > { %s2618_s19 = scalar_select %p63_p5, %s2480_s28, %s65_s15  }
  0x14   : > { %p204_p8 = scmp.eq.s32.totalorder %s203_s20, 0  ;;  %p222_p9 = scmp.ne.s32.totalorder %s2468_s25, %s2464_s24 }
  0x15   : > { %p2624_p10 = por %p217_p7, %p216_p6  ;;  %p223_p11 = scmp.eq.s32.totalorder %s1703_s12, 7 }
  0x16   : > { %s2629_s22 = scalar_select %p204_p8, %s2472_s26, %s206_s18  }
  0x17   : > { %p2631_p12 = por %p223_p11, %p222_p9  ;;  %p1705_p13 = scmp.ge.s32.totalorder %s2500_s10, 8 }
  0x19   : > { %248 = sbr.rel (%p1705_p13) target bundleno = 90 (0x5a), region = 28 }
  0x20   : > { %259 = sbr.rel (!%p2608_p3) target bundleno = 83 (0x53), region = 36  ;;  %s261_s11 = sand.u32 (%p2608_p3), 1, %s2480_s28  }
  0x21   : > { %s1803_s15 = sshll.u32 (%p2608_p3), %s2492_s8, 7  ;;  %s2289_s16 = smul.u32 (%p2608_p3), 640, %s261_s11 }
  0x22   : > { %s3057_s1 = sld [smem:[#allocation10_spill]] (%p2608_p3) }
  0x23   : > { %s2651_s14 = scalar_lea.vmem (%p2608_p3), [#allocation3], %s2289_s16 }
  0x28   : > { %s2643_s12 = scalar_lea.vmem %s3057_s1, %s1803_s15 }
  0x29   : > { %v452_v0 = vld [vmem:[%s2643_s12] sm:$0xff]  ;;  %v454_v1 = vld [vmem:[%s2643_s12 + $0x8] sm:$0xff]  ;;  %v456_v2 = vld [vmem:[%s2643_s12 + $0x10] sm:$0xff] }
  0x2a   : > { %v458_v3 = vld [vmem:[%s2643_s12 + $0x18] sm:$0xff]  ;;  %v460_v4 = vld [vmem:[%s2643_s12 + $0x20] sm:$0xff]  ;;  %v462_v5 = vld [vmem:[%s2643_s12 + $0x28] sm:$0xff]  ;;  %453 = vst [vmem:[%s2651_s14] sm:$0xff] %v452_v0 }
  0x2b   : > { %455 = vst [vmem:[%s2651_s14 + $0x8] sm:$0xff] %v454_v1  ;;  %457 = vst [vmem:[%s2651_s14 + $0x10] sm:$0xff] %v456_v2  ;;  %v464_v6 = vld [vmem:[%s2643_s12 + $0x30] sm:$0xff]  ;;  %v466_v7 = vld [vmem:[%s2643_s12 + $0x38] sm:$0xff] }
  0x2c   : > { %459 = vst [vmem:[%s2651_s14 + $0x18] sm:$0xff] %v458_v3  ;;  %461 = vst [vmem:[%s2651_s14 + $0x20] sm:$0xff] %v460_v4  ;;  %v468_v8 = vld [vmem:[%s2643_s12 + $0x40] sm:$0xff]  ;;  %v470_v9 = vld [vmem:[%s2643_s12 + $0x48] sm:$0xff] }
  0x2d   : > { %463 = vst [vmem:[%s2651_s14 + $0x28] sm:$0xff] %v462_v5  ;;  %465 = vst [vmem:[%s2651_s14 + $0x30] sm:$0xff] %v464_v6  ;;  %v472_v10 = vld [vmem:[%s2643_s12 + $0x50] sm:$0xff]  ;;  %v474_v11 = vld [vmem:[%s2643_s12 + $0x58] sm:$0xff] }
  0x2e   : > { %467 = vst [vmem:[%s2651_s14 + $0x38] sm:$0xff] %v466_v7  ;;  %469 = vst [vmem:[%s2651_s14 + $0x40] sm:$0xff] %v468_v8  ;;  %v476_v12 = vld [vmem:[%s2643_s12 + $0x60] sm:$0xff]  ;;  %v478_v13 = vld [vmem:[%s2643_s12 + $0x68] sm:$0xff] }
  0x2f   : > { %471 = vst [vmem:[%s2651_s14 + $0x48] sm:$0xff] %v470_v9  ;;  %473 = vst [vmem:[%s2651_s14 + $0x50] sm:$0xff] %v472_v10  ;;  %v480_v14 = vld [vmem:[%s2643_s12 + $0x70] sm:$0xff]  ;;  %v482_v15 = vld [vmem:[%s2643_s12 + $0x78] sm:$0xff] }
  0x30   : > { %475 = vst [vmem:[%s2651_s14 + $0x58] sm:$0xff] %v474_v11  ;;  %477 = vst [vmem:[%s2651_s14 + $0x60] sm:$0xff] %v476_v12  ;;  %v484_v16 = vld [vmem:[%s2643_s12 + $0x200] sm:$0xff]  ;;  %v486_v17 = vld [vmem:[%s2643_s12 + $0x208] sm:$0xff] }
  0x31   : > { %479 = vst [vmem:[%s2651_s14 + $0x68] sm:$0xff] %v478_v13  ;;  %481 = vst [vmem:[%s2651_s14 + $0x70] sm:$0xff] %v480_v14  ;;  %v488_v18 = vld [vmem:[%s2643_s12 + $0x210] sm:$0xff]  ;;  %v490_v19 = vld [vmem:[%s2643_s12 + $0x218] sm:$0xff] }
  0x32   : > { %483 = vst [vmem:[%s2651_s14 + $0x78] sm:$0xff] %v482_v15  ;;  %485 = vst [vmem:[%s2651_s14 + $0x80] sm:$0xff] %v484_v16  ;;  %v492_v20 = vld [vmem:[%s2643_s12 + $0x220] sm:$0xff]  ;;  %v494_v21 = vld [vmem:[%s2643_s12 + $0x228] sm:$0xff] }
  0x33   : > { %487 = vst [vmem:[%s2651_s14 + $0x88] sm:$0xff] %v486_v17  ;;  %489 = vst [vmem:[%s2651_s14 + $0x90] sm:$0xff] %v488_v18  ;;  %v496_v22 = vld [vmem:[%s2643_s12 + $0x230] sm:$0xff]  ;;  %v498_v23 = vld [vmem:[%s2643_s12 + $0x238] sm:$0xff] }
  0x34   : > { %491 = vst [vmem:[%s2651_s14 + $0x98] sm:$0xff] %v490_v19  ;;  %493 = vst [vmem:[%s2651_s14 + $0xa0] sm:$0xff] %v492_v20  ;;  %v500_v24 = vld [vmem:[%s2643_s12 + $0x240] sm:$0xff]  ;;  %v502_v25 = vld [vmem:[%s2643_s12 + $0x248] sm:$0xff] }
  0x35   : > { %495 = vst [vmem:[%s2651_s14 + $0xa8] sm:$0xff] %v494_v21  ;;  %497 = vst [vmem:[%s2651_s14 + $0xb0] sm:$0xff] %v496_v22  ;;  %v504_v26 = vld [vmem:[%s2643_s12 + $0x250] sm:$0xff]  ;;  %v506_v27 = vld [vmem:[%s2643_s12 + $0x258] sm:$0xff] }
  0x36   : > { %499 = vst [vmem:[%s2651_s14 + $0xb8] sm:$0xff] %v498_v23  ;;  %501 = vst [vmem:[%s2651_s14 + $0xc0] sm:$0xff] %v500_v24  ;;  %v508_v28 = vld [vmem:[%s2643_s12 + $0x260] sm:$0xff]  ;;  %v510_v29 = vld [vmem:[%s2643_s12 + $0x268] sm:$0xff] }
  0x37   : > { %503 = vst [vmem:[%s2651_s14 + $0xc8] sm:$0xff] %v502_v25  ;;  %505 = vst [vmem:[%s2651_s14 + $0xd0] sm:$0xff] %v504_v26  ;;  %v512_v30 = vld [vmem:[%s2643_s12 + $0x270] sm:$0xff]  ;;  %v514_v31 = vld [vmem:[%s2643_s12 + $0x278] sm:$0xff] }
  0x38   : > { %507 = vst [vmem:[%s2651_s14 + $0xd8] sm:$0xff] %v506_v27  ;;  %509 = vst [vmem:[%s2651_s14 + $0xe0] sm:$0xff] %v508_v28  ;;  %v516_v32 = vld [vmem:[%s2643_s12 + $0x400] sm:$0xff]  ;;  %v518_v33 = vld [vmem:[%s2643_s12 + $0x408] sm:$0xff] }
  0x39   : > { %511 = vst [vmem:[%s2651_s14 + $0xe8] sm:$0xff] %v510_v29  ;;  %513 = vst [vmem:[%s2651_s14 + $0xf0] sm:$0xff] %v512_v30  ;;  %v520_v34 = vld [vmem:[%s2643_s12 + $0x410] sm:$0xff]  ;;  %v522_v35 = vld [vmem:[%s2643_s12 + $0x418] sm:$0xff] }
  0x3a   : > { %515 = vst [vmem:[%s2651_s14 + $0xf8] sm:$0xff] %v514_v31  ;;  %517 = vst [vmem:[%s2651_s14 + $0x100] sm:$0xff] %v516_v32  ;;  %v524_v36 = vld [vmem:[%s2643_s12 + $0x420] sm:$0xff]  ;;  %v526_v37 = vld [vmem:[%s2643_s12 + $0x428] sm:$0xff] }
  0x3b   : > { %519 = vst [vmem:[%s2651_s14 + $0x108] sm:$0xff] %v518_v33  ;;  %521 = vst [vmem:[%s2651_s14 + $0x110] sm:$0xff] %v520_v34  ;;  %v528_v38 = vld [vmem:[%s2643_s12 + $0x430] sm:$0xff]  ;;  %v530_v39 = vld [vmem:[%s2643_s12 + $0x438] sm:$0xff] }
  0x3c   : > { %523 = vst [vmem:[%s2651_s14 + $0x118] sm:$0xff] %v522_v35  ;;  %525 = vst [vmem:[%s2651_s14 + $0x120] sm:$0xff] %v524_v36  ;;  %v532_v40 = vld [vmem:[%s2643_s12 + $0x440] sm:$0xff]  ;;  %v534_v41 = vld [vmem:[%s2643_s12 + $0x448] sm:$0xff] }
  0x3d   : > { %527 = vst [vmem:[%s2651_s14 + $0x128] sm:$0xff] %v526_v37  ;;  %529 = vst [vmem:[%s2651_s14 + $0x130] sm:$0xff] %v528_v38  ;;  %v536_v42 = vld [vmem:[%s2643_s12 + $0x450] sm:$0xff]  ;;  %v538_v43 = vld [vmem:[%s2643_s12 + $0x458] sm:$0xff] }
  0x3e   : > { %531 = vst [vmem:[%s2651_s14 + $0x138] sm:$0xff] %v530_v39  ;;  %533 = vst [vmem:[%s2651_s14 + $0x140] sm:$0xff] %v532_v40  ;;  %v540_v44 = vld [vmem:[%s2643_s12 + $0x460] sm:$0xff]  ;;  %v542_v45 = vld [vmem:[%s2643_s12 + $0x468] sm:$0xff] }
  0x3f   : > { %535 = vst [vmem:[%s2651_s14 + $0x148] sm:$0xff] %v534_v41  ;;  %537 = vst [vmem:[%s2651_s14 + $0x150] sm:$0xff] %v536_v42  ;;  %v544_v46 = vld [vmem:[%s2643_s12 + $0x470] sm:$0xff]  ;;  %v546_v47 = vld [vmem:[%s2643_s12 + $0x478] sm:$0xff] }
  0x40   : > { %539 = vst [vmem:[%s2651_s14 + $0x158] sm:$0xff] %v538_v43  ;;  %541 = vst [vmem:[%s2651_s14 + $0x160] sm:$0xff] %v540_v44  ;;  %v548_v48 = vld [vmem:[%s2643_s12 + $0x600] sm:$0xff]  ;;  %v550_v49 = vld [vmem:[%s2643_s12 + $0x608] sm:$0xff] }
  0x41   : > { %543 = vst [vmem:[%s2651_s14 + $0x168] sm:$0xff] %v542_v45  ;;  %545 = vst [vmem:[%s2651_s14 + $0x170] sm:$0xff] %v544_v46  ;;  %v552_v50 = vld [vmem:[%s2643_s12 + $0x610] sm:$0xff]  ;;  %v554_v51 = vld [vmem:[%s2643_s12 + $0x618] sm:$0xff] }
  0x42   : > { %547 = vst [vmem:[%s2651_s14 + $0x178] sm:$0xff] %v546_v47  ;;  %549 = vst [vmem:[%s2651_s14 + $0x180] sm:$0xff] %v548_v48  ;;  %v556_v52 = vld [vmem:[%s2643_s12 + $0x620] sm:$0xff]  ;;  %v558_v53 = vld [vmem:[%s2643_s12 + $0x628] sm:$0xff] }
  0x43   : > { %551 = vst [vmem:[%s2651_s14 + $0x188] sm:$0xff] %v550_v49  ;;  %553 = vst [vmem:[%s2651_s14 + $0x190] sm:$0xff] %v552_v50  ;;  %v560_v54 = vld [vmem:[%s2643_s12 + $0x630] sm:$0xff]  ;;  %v562_v55 = vld [vmem:[%s2643_s12 + $0x638] sm:$0xff] }
  0x44   : > { %555 = vst [vmem:[%s2651_s14 + $0x198] sm:$0xff] %v554_v51  ;;  %557 = vst [vmem:[%s2651_s14 + $0x1a0] sm:$0xff] %v556_v52  ;;  %v564_v56 = vld [vmem:[%s2643_s12 + $0x640] sm:$0xff]  ;;  %v566_v57 = vld [vmem:[%s2643_s12 + $0x648] sm:$0xff] }
  0x45   : > { %559 = vst [vmem:[%s2651_s14 + $0x1a8] sm:$0xff] %v558_v53  ;;  %561 = vst [vmem:[%s2651_s14 + $0x1b0] sm:$0xff] %v560_v54  ;;  %v568_v58 = vld [vmem:[%s2643_s12 + $0x650] sm:$0xff]  ;;  %v570_v59 = vld [vmem:[%s2643_s12 + $0x658] sm:$0xff] }
  0x46   : > { %563 = vst [vmem:[%s2651_s14 + $0x1b8] sm:$0xff] %v562_v55  ;;  %565 = vst [vmem:[%s2651_s14 + $0x1c0] sm:$0xff] %v564_v56  ;;  %v572_v60 = vld [vmem:[%s2643_s12 + $0x660] sm:$0xff]  ;;  %v574_v61 = vld [vmem:[%s2643_s12 + $0x668] sm:$0xff] }
  0x47   : > { %567 = vst [vmem:[%s2651_s14 + $0x1c8] sm:$0xff] %v566_v57  ;;  %569 = vst [vmem:[%s2651_s14 + $0x1d0] sm:$0xff] %v568_v58  ;;  %v576_v62 = vld [vmem:[%s2643_s12 + $0x670] sm:$0xff]  ;;  %v578_v63 = vld [vmem:[%s2643_s12 + $0x678] sm:$0xff] }
  0x48   : > { %571 = vst [vmem:[%s2651_s14 + $0x1d8] sm:$0xff] %v570_v59  ;;  %573 = vst [vmem:[%s2651_s14 + $0x1e0] sm:$0xff] %v572_v60  ;;  %v580_v0 = vld [vmem:[%s2643_s12 + $0x800] sm:$0xff]  ;;  %v582_v1 = vld [vmem:[%s2643_s12 + $0x808] sm:$0xff] }
  0x49   : > { %575 = vst [vmem:[%s2651_s14 + $0x1e8] sm:$0xff] %v574_v61  ;;  %577 = vst [vmem:[%s2651_s14 + $0x1f0] sm:$0xff] %v576_v62  ;;  %v584_v2 = vld [vmem:[%s2643_s12 + $0x810] sm:$0xff]  ;;  %v586_v3 = vld [vmem:[%s2643_s12 + $0x818] sm:$0xff] }
  0x4a   : > { %579 = vst [vmem:[%s2651_s14 + $0x1f8] sm:$0xff] %v578_v63  ;;  %581 = vst [vmem:[%s2651_s14 + $0x200] sm:$0xff] %v580_v0  ;;  %v588_v4 = vld [vmem:[%s2643_s12 + $0x820] sm:$0xff]  ;;  %v590_v5 = vld [vmem:[%s2643_s12 + $0x828] sm:$0xff] }
  0x4b   : > { %583 = vst [vmem:[%s2651_s14 + $0x208] sm:$0xff] %v582_v1  ;;  %585 = vst [vmem:[%s2651_s14 + $0x210] sm:$0xff] %v584_v2  ;;  %v592_v6 = vld [vmem:[%s2643_s12 + $0x830] sm:$0xff]  ;;  %v594_v7 = vld [vmem:[%s2643_s12 + $0x838] sm:$0xff] }
  0x4c   : > { %587 = vst [vmem:[%s2651_s14 + $0x218] sm:$0xff] %v586_v3  ;;  %589 = vst [vmem:[%s2651_s14 + $0x220] sm:$0xff] %v588_v4  ;;  %v596_v8 = vld [vmem:[%s2643_s12 + $0x840] sm:$0xff]  ;;  %v598_v9 = vld [vmem:[%s2643_s12 + $0x848] sm:$0xff] }
  0x4d   : > { %591 = vst [vmem:[%s2651_s14 + $0x228] sm:$0xff] %v590_v5  ;;  %593 = vst [vmem:[%s2651_s14 + $0x230] sm:$0xff] %v592_v6  ;;  %v600_v10 = vld [vmem:[%s2643_s12 + $0x850] sm:$0xff]  ;;  %v602_v11 = vld [vmem:[%s2643_s12 + $0x858] sm:$0xff] }
  0x4e   : > { %595 = vst [vmem:[%s2651_s14 + $0x238] sm:$0xff] %v594_v7  ;;  %597 = vst [vmem:[%s2651_s14 + $0x240] sm:$0xff] %v596_v8  ;;  %v604_v12 = vld [vmem:[%s2643_s12 + $0x860] sm:$0xff]  ;;  %v606_v13 = vld [vmem:[%s2643_s12 + $0x868] sm:$0xff] }
  0x4f   : > { %599 = vst [vmem:[%s2651_s14 + $0x248] sm:$0xff] %v598_v9  ;;  %601 = vst [vmem:[%s2651_s14 + $0x250] sm:$0xff] %v600_v10  ;;  %v608_v14 = vld [vmem:[%s2643_s12 + $0x870] sm:$0xff]  ;;  %v610_v15 = vld [vmem:[%s2643_s12 + $0x878] sm:$0xff] }
  0x50   : > { %603 = vst [vmem:[%s2651_s14 + $0x258] sm:$0xff] %v602_v11  ;;  %605 = vst [vmem:[%s2651_s14 + $0x260] sm:$0xff] %v604_v12 }
  0x51   : > { %607 = vst [vmem:[%s2651_s14 + $0x268] sm:$0xff] %v606_v13  ;;  %609 = vst [vmem:[%s2651_s14 + $0x270] sm:$0xff] %v608_v14 }
  0x52   : > { %611 = vst [vmem:[%s2651_s14 + $0x278] sm:$0xff] %v610_v15 }
  0x53 PF: > { %617 = sbr.rel (!%p2608_p3) target bundleno = 90 (0x5a), region = 74  ;;  %s619_s18 = sand.u32 (%p2608_p3), 1, %s2480_s28  }
  0x54   : > { %s622_s16 = scalar_lea.vmem (%p2608_p3), %s3043_s2, %s2492_s8  ;;  %s2290_s20 = smul.u32 (%p2608_p3), 5, %s619_s18 }
  0x55   : > { %v638_v16 = vld [vmem:[%s622_s16] sm:$0x1] (%p2608_p3)  ;;  %v640_v17 = vld [vmem:[%s622_s16 + $0x4] sm:$0x1] (%p2608_p3)  ;;  %v642_v18 = vld [vmem:[%s622_s16 + $0x8] sm:$0x1] (%p2608_p3) }
  0x56   : > { %v644_v19 = vld [vmem:[%s622_s16 + $0xc] sm:$0x1] (%p2608_p3)  ;;  %v646_v20 = vld [vmem:[%s622_s16 + $0x10] sm:$0x1] (%p2608_p3)  ;;  %s621_s12 = scalar_lea.vmem (%p2608_p3), [#allocation4], %s2290_s20 }
  0x57   : > { %639 = vst [vmem:[%s621_s12] sm:$0x1] (%p2608_p3), %v638_v16  ;;  %641 = vst [vmem:[%s621_s12 + $0x1] sm:$0x1] (%p2608_p3), %v640_v17 }
  0x58   : > { %643 = vst [vmem:[%s621_s12 + $0x2] sm:$0x1] (%p2608_p3), %v642_v18  ;;  %645 = vst [vmem:[%s621_s12 + $0x3] sm:$0x1] (%p2608_p3), %v644_v19 }
  0x59   : > { %647 = vst [vmem:[%s621_s12 + $0x4] sm:$0x1] (%p2608_p3), %v646_v20 }
  0x5a PF: > { %p1708_p0 = scmp.ge.s32.totalorder %s2500_s10, 1  ;;  %p679_p1 = scmp.lt.s32.totalorder %s2500_s10, 9 }
  0x5c   : > { %p680_p2 = pnand %p1708_p0, %p679_p1 }
  0x5d   : > { %s686_s17 = sand.u32 (!%p680_p2), 1, %s2476_s27   ;;  %s3050_s14 = sand.u32 (!%p680_p2), 1, %s2468_s25   ;;  %vm1264_vm0 = vcmask (!%p680_p2), 261120   ;;  %vm1352_vm2 = vcmask (!%p680_p2), 130048  }
  0x5e   : > { %683 = sbr.rel (%p680_p2) target bundleno = 1391 (0x56f), region = 112  ;;  %s2822_s11 = sshll.u32 (!%p680_p2), %s3050_s14, 4  ;;  %vm2272_vm1 = vmpackc.low (!%p680_p2), %vm1264_vm0, %vm1264_vm0 }
  0x5f   : > { %s2291_s18 = smul.u32 (!%p680_p2), 640, %s686_s17  ;;  %p738_p3 = scmp.lt.s32.totalorder (!%p680_p2), %s2488_s30, 1 }
  0x60   : > { %s3058_s0 = sld [smem:[#allocation9_spill]] (!%p680_p2)  ;;  %p743_p4 = scmp.lt.s32.totalorder (!%p680_p2), %s2484_s29, 3 }
  0x61   : > { %s2825_s15 = scalar_lea.vmem (!%p680_p2), [#allocation3], %s2291_s18  ;;  %p1795_p5 = scmp.ne.s32.totalorder (!%p680_p2), %s2484_s29, 0 }
  0x62   : > { %v750_v21 = vld [vmem:[%s2825_s15] sm:$0xff] (!%p680_p2)  ;;  %v751_v22 = vld [vmem:[%s2825_s15 + $0x8] sm:$0xff] (!%p680_p2)  ;;  %v752_v26 = vld [vmem:[%s2825_s15 + $0x10] sm:$0xff] (!%p680_p2) }
  0x63   : > { %v1715_v23 = vld [vmem:[%s2825_s15 + $0x80] sm:$0xff] (!%p680_p2)  ;;  %v2111_v24 = vpack.c.bf16 (!%p680_p2), %v751_v22, %v750_v21  ;;  %v1716_v25 = vld [vmem:[%s2825_s15 + $0x88] sm:$0xff] (!%p680_p2)  ;;  %v753_v27 = vld [vmem:[%s2825_s15 + $0x18] sm:$0xff] (!%p680_p2) }
  0x64   : > { %v2143_v28 = vpack.c.bf16 (!%p680_p2), %v1716_v25, %v1715_v23  ;;  %v2115_v29 = vpack.c.bf16 (!%p680_p2), %v753_v27, %v752_v26  ;;  %v1717_v30 = vld [vmem:[%s2825_s15 + $0x90] sm:$0xff] (!%p680_p2)  ;;  %v1718_v31 = vld [vmem:[%s2825_s15 + $0x98] sm:$0xff] (!%p680_p2)  ;;  %v754_v32 = vld [vmem:[%s2825_s15 + $0x20] sm:$0xff] (!%p680_p2) }
  0x65   : > { %s739_s16 = scalar_select %p738_p3, %s2488_s30, 1  ;;  %2112 = vmatprep.subr.bf16.mxu0 %v2111_v24  ;;  %v2147_v33 = vpack.c.bf16 %v1718_v31, %v1717_v30  ;;  %v755_v34 = vld [vmem:[%s2825_s15 + $0x28] sm:$0xff]  ;;  %v1719_v35 = vld [vmem:[%s2825_s15 + $0xa0] sm:$0xff]  ;;  %v756_v39 = vld [vmem:[%s2825_s15 + $0x30] sm:$0xff] }
  0x66   : > { %v1720_v36 = vld [vmem:[%s2825_s15 + $0xa8] sm:$0xff]  ;;  %2144 = vmatprep.subr.bf16.mxu1 %v2143_v28  ;;  %2114 = vmatpush3.bf16.msra.mxu0 %v2111_v24  ;;  %v2119_v37 = vpack.c.bf16 %v755_v34, %v754_v32  ;;  %v757_v40 = vld [vmem:[%s2825_s15 + $0x38] sm:$0xff]  ;;  %v1721_v41 = vld [vmem:[%s2825_s15 + $0xb0] sm:$0xff] }
  0x67   : > { %s1804_s20 = sshll.u32 %s739_s16, 4  ;;  %2146 = vmatpush3.bf16.msra.mxu1 %v2143_v28  ;;  %2116 = vmatprep.subr.bf16.mxu0 %v2115_v29  ;;  %v2151_v38 = vpack.c.bf16 %v1720_v36, %v1719_v35  ;;  %v1722_v42 = vld [vmem:[%s2825_s15 + $0xb8] sm:$0xff]  ;;  %v2123_v43 = vpack.c.bf16 %v757_v40, %v756_v39  ;;  %v758_v45 = vld [vmem:[%s2825_s15 + $0x40] sm:$0xff]  ;;  %v759_v46 = vld [vmem:[%s2825_s15 + $0x48] sm:$0xff] }
  0x68   : > { %2148 = vmatprep.subr.bf16.mxu1 %v2147_v33  ;;  %s2847_s14 = scalar_lea.vmem %s3058_s0, %s1804_s20  ;;  %v2155_v44 = vpack.c.bf16 %v1722_v42, %v1721_v41  ;;  %v1723_v48 = vld [vmem:[%s2825_s15 + $0xc0] sm:$0xff]  ;;  %v1724_v49 = vld [vmem:[%s2825_s15 + $0xc8] sm:$0xff]  ;;  %v2127_v50 = vpack.c.bf16 %v759_v46, %v758_v45  ;;  %v760_v52 = vld [vmem:[%s2825_s15 + $0x50] sm:$0xff] }
  0x69   : > { %v2852_v47 = vld [vmem:[%s2847_s14] sm:$0xff]  ;;  %v2159_v51 = vpack.c.bf16 %v1724_v49, %v1723_v48  ;;  %v761_v53 = vld [vmem:[%s2825_s15 + $0x58] sm:$0xff]  ;;  %v762_v58 = vld [vmem:[%s2825_s15 + $0x60] sm:$0xff]  ;;  %s744_s0 = scalar_select %p743_p4, %s2484_s29, 3 }
  0x6a   : > { %2118 = vmatpush3.bf16.msra.mxu0 %v2115_v29  ;;  %1943 = vmatprep.mubr.f32.mxu0 %v2852_v47  ;;  %v1725_v54 = vld [vmem:[%s2825_s15 + $0xd0] sm:$0xff]  ;;  %v1726_v55 = vld [vmem:[%s2825_s15 + $0xd8] sm:$0xff]  ;;  %v2131_v56 = vpack.c.bf16 %v761_v53, %v760_v52  ;;  %v763_v59 = vld [vmem:[%s2825_s15 + $0x68] sm:$0xff] }
  0x6b   : > { %2150 = vmatpush3.bf16.msra.mxu1 %v2147_v33  ;;  %2120 = vmatprep.subr.bf16.mxu0 %v2119_v37  ;;  %v2163_v57 = vpack.c.bf16 %v1726_v55, %v1725_v54  ;;  %v1727_v60 = vld [vmem:[%s2825_s15 + $0xe0] sm:$0xff]  ;;  %v1728_v61 = vld [vmem:[%s2825_s15 + $0xe8] sm:$0xff]  ;;  %v2135_v62 = vpack.c.bf16 %v763_v59, %v762_v58  ;;  %v764_v0 = vld [vmem:[%s2825_s15 + $0x70] sm:$0xff]  ;;  %s1805_s1 = sshll.u32 %s744_s0, 5 }
  0x6c   : > { %2152 = vmatprep.subr.bf16.mxu1 %v2151_v38  ;;  %1978 = vmatprep.mubr.f32.mxu1 %v2852_v47  ;;  %v2167_v63 = vpack.c.bf16 %v1728_v61, %v1727_v60  ;;  %v765_v1 = vld [vmem:[%s2825_s15 + $0x78] sm:$0xff]  ;;  %v1729_v2 = vld [vmem:[%s2825_s15 + $0xf0] sm:$0xff]  ;;  %v1733_v6 = vld [vmem:[%s2825_s15 + $0x100] sm:$0xff]  ;;  %s747_s12 = scalar_lea.vmem %s3044_s3, %s1805_s1 }
  0x6d   : > { %v1730_v3 = vld [vmem:[%s2825_s15 + $0xf8] sm:$0xff]  ;;  %v2139_v4 = vpack.c.bf16 %v765_v1, %v764_v0  ;;  %v1734_v7 = vld [vmem:[%s2825_s15 + $0x108] sm:$0xff]  ;;  %v1751_v8 = vld [vmem:[%s2825_s15 + $0x180] sm:$0xff] }
  0x6e   : > { %2122 = vmatpush3.bf16.msra.mxu0 %v2119_v37  ;;  %v2171_v5 = vpack.c.bf16 %v1730_v3, %v1729_v2  ;;  %v1752_v9 = vld [vmem:[%s2825_s15 + $0x188] sm:$0xff]  ;;  %v2175_v10 = vpack.c.bf16 %v1734_v7, %v1733_v6  ;;  %v1735_v12 = vld [vmem:[%s2825_s15 + $0x110] sm:$0xff]  ;;  %v1736_v13 = vld [vmem:[%s2825_s15 + $0x118] sm:$0xff] }
  0x6f   : > { %2154 = vmatpush3.bf16.msra.mxu1 %v2151_v38  ;;  %2124 = vmatprep.subr.bf16.mxu0 %v2123_v43  ;;  %v2207_v11 = vpack.c.bf16 %v1752_v9, %v1751_v8  ;;  %v1753_v14 = vld [vmem:[%s2825_s15 + $0x190] sm:$0xff]  ;;  %v1754_v15 = vld [vmem:[%s2825_s15 + $0x198] sm:$0xff]  ;;  %v2179_v17 = vpack.c.bf16 %v1736_v13, %v1735_v12  ;;  %v1737_v19 = vld [vmem:[%s2825_s15 + $0x120] sm:$0xff] }
  0x70   : > { %2156 = vmatprep.subr.bf16.mxu1 %v2155_v44  ;;  %v2879_v16 = vld [vmem:[%s2847_s14 + $0x8] sm:$0xff]  ;;  %v2211_v18 = vpack.c.bf16 %v1754_v15, %v1753_v14  ;;  %v1738_v20 = vld [vmem:[%s2825_s15 + $0x128] sm:$0xff]  ;;  %v1755_v21 = vld [vmem:[%s2825_s15 + $0x1a0] sm:$0xff]  ;;  %s2292_s14 = smul.u32 5, %s686_s17 }
  0x71   : > { %v1756_v22 = vld [vmem:[%s2825_s15 + $0x1a8] sm:$0xff]  ;;  %v2183_v23 = vpack.c.bf16 %v1738_v20, %v1737_v19  ;;  %v1739_v25 = vld [vmem:[%s2825_s15 + $0x130] sm:$0xff]  ;;  %v1740_v26 = vld [vmem:[%s2825_s15 + $0x138] sm:$0xff] }
  0x72   : > { %2126 = vmatpush3.bf16.msra.mxu0 %v2123_v43  ;;  %v2215_v24 = vpack.c.bf16 %v1756_v22, %v1755_v21  ;;  %v1757_v27 = vld [vmem:[%s2825_s15 + $0x1b0] sm:$0xff]  ;;  %v1758_v28 = vld [vmem:[%s2825_s15 + $0x1b8] sm:$0xff]  ;;  %v2187_v29 = vpack.c.bf16 %v1740_v26, %v1739_v25  ;;  %v1741_v31 = vld [vmem:[%s2825_s15 + $0x140] sm:$0xff]  ;;  %s2914_s16 = scalar_lea.vmem [#allocation4], %s2292_s14 }
  0x73   : > { %2158 = vmatpush3.bf16.msra.mxu1 %v2155_v44  ;;  %2128 = vmatprep.subr.bf16.mxu0 %v2127_v50  ;;  %v2219_v30 = vpack.c.bf16 %v1758_v28, %v1757_v27  ;;  %v1742_v32 = vld [vmem:[%s2825_s15 + $0x148] sm:$0xff]  ;;  %v1759_v33 = vld [vmem:[%s2825_s15 + $0x1c0] sm:$0xff]  ;;  %v1743_v37 = vld [vmem:[%s2825_s15 + $0x150] sm:$0xff] }
  0x74   : > { %2160 = vmatprep.subr.bf16.mxu1 %v2159_v51  ;;  %v1760_v34 = vld [vmem:[%s2825_s15 + $0x1c8] sm:$0xff]  ;;  %v2191_v35 = vpack.c.bf16 %v1742_v32, %v1741_v31  ;;  %v1744_v38 = vld [vmem:[%s2825_s15 + $0x158] sm:$0xff]  ;;  %v1761_v39 = vld [vmem:[%s2825_s15 + $0x1d0] sm:$0xff] }
  0x75   : > { %v2223_v36 = vpack.c.bf16 %v1760_v34, %v1759_v33  ;;  %v1762_v40 = vld [vmem:[%s2825_s15 + $0x1d8] sm:$0xff]  ;;  %v2195_v41 = vpack.c.bf16 %v1744_v38, %v1743_v37  ;;  %v1745_v43 = vld [vmem:[%s2825_s15 + $0x160] sm:$0xff]  ;;  %v1746_v44 = vld [vmem:[%s2825_s15 + $0x168] sm:$0xff] }
  0x76   : > { %2130 = vmatpush3.bf16.msra.mxu0 %v2127_v50  ;;  %v2227_v42 = vpack.c.bf16 %v1762_v40, %v1761_v39  ;;  %v1763_v45 = vld [vmem:[%s2825_s15 + $0x1e0] sm:$0xff]  ;;  %v1764_v46 = vld [vmem:[%s2825_s15 + $0x1e8] sm:$0xff]  ;;  %v2199_v48 = vpack.c.bf16 %v1746_v44, %v1745_v43  ;;  %v1747_v50 = vld [vmem:[%s2825_s15 + $0x170] sm:$0xff] }
  0x77   : > { %2162 = vmatpush3.bf16.msra.mxu1 %v2159_v51  ;;  %2132 = vmatprep.subr.bf16.mxu0 %v2131_v56  ;;  %v2231_v49 = vpack.c.bf16 %v1764_v46, %v1763_v45  ;;  %v1748_v51 = vld [vmem:[%s2825_s15 + $0x178] sm:$0xff]  ;;  %v1765_v52 = vld [vmem:[%s2825_s15 + $0x1f0] sm:$0xff]  ;;  %v1768_v12 = vld [vmem:[%s2914_s16 + $0x3] ss:$0 sm:$0xff] }
  0x78   : > { %2164 = vmatprep.subr.bf16.mxu1 %v2163_v57  ;;  %v1766_v53 = vld [vmem:[%s2825_s15 + $0x1f8] sm:$0xff]  ;;  %v2203_v54 = vpack.c.bf16 %v1748_v51, %v1747_v50  ;;  %v1250_v3 = vld [vmem:[%s3047_s6] sm:$0xff] }
  0x79   : > { %v2235_v55 = vpack.c.bf16 %v1766_v53, %v1765_v52  ;;  %v1249_v59 = vld [vmem:[%s3046_s5 + $0x8] sm:$0xff]  ;;  %v1771_v31 = vld [vmem:[%s2825_s15 + $0x210] sm:$0xff] }
  0x7a   : > { %2134 = vmatpush3.bf16.msra.mxu0 %v2131_v56  ;;  %v1714_v56 = vld [vmem:[%s2914_s16] ss:$0 sm:$0xff]  ;;  %v1772_v33 = vld [vmem:[%s2825_s15 + $0x218] sm:$0xff]  ;;  %v1775_v38 = vld [vmem:[%s2825_s15 + $0x230] sm:$0xff] }
  0x7b   : > { %2166 = vmatpush3.bf16.msra.mxu1 %v2163_v57  ;;  %2136 = vmatprep.subr.bf16.mxu0 %v2135_v62  ;;  %v1732_v57 = vld [vmem:[%s2914_s16 + $0x1] ss:$0 sm:$0xff]  ;;  %v2243_v34 = vpack.c.bf16 %v1772_v33, %v1771_v31  ;;  %v1776_v39 = vld [vmem:[%s2825_s15 + $0x238] sm:$0xff]  ;;  %v1779_v44 = vld [vmem:[%s2825_s15 + $0x250] sm:$0xff] }
  0x7c   : > { %2168 = vmatprep.subr.bf16.mxu1 %v2167_v63  ;;  %v2251_v40 = vpack.c.bf16 %v1776_v39, %v1775_v38  ;;  %v1780_v45 = vld [vmem:[%s2825_s15 + $0x258] sm:$0xff]  ;;  %v1783_v51 = vld [vmem:[%s2825_s15 + $0x270] sm:$0xff] }
  0x7d   : > { %v2259_v46 = vpack.c.bf16 %v1780_v45, %v1779_v44  ;;  %v1784_v52 = vld [vmem:[%s2825_s15 + $0x278] sm:$0xff] }
  0x7e   : > { %2138 = vmatpush3.bf16.msra.mxu0 %v2135_v62  ;;  %v1251_v62 = vld [vmem:[%s3047_s6 + $0x8] sm:$0xff]  ;;  %v2267_v53 = vpack.c.bf16 %v1784_v52, %v1783_v51 }
  0x7f   : > { %2170 = vmatpush3.bf16.msra.mxu1 %v2167_v63  ;;  %2140 = vmatprep.subr.bf16.mxu0 %v2139_v4  ;;  %v1248_v63 = vld [vmem:[%s3046_s5] sm:$0xff] }
  0x80   : > { %2172 = vmatprep.subr.bf16.mxu1 %v2171_v5 }
  0x82   : > { %2142 = vmatpush3.bf16.msra.mxu0 %v2139_v4 }
  0x83   : > { %2174 = vmatpush3.bf16.msra.mxu1 %v2171_v5  ;;  %2176 = vmatprep.subr.bf16.mxu0 %v2175_v10 }
  0x84   : > { %2208 = vmatprep.subr.bf16.mxu1 %v2207_v11 }
  0x85   : > { %1944 = vmatmul.mubr.f32.vlgmr.msra.gmra.mrb[0].mxu0 %v2879_v16 }
  0x86   : > { %1979 = vmatmul.mubr.f32.vlgmr.msra.gmra.mrb[0].mxu1 %v2879_v16  ;;  %2178 = vmatpush3.bf16.msra.mxu0 %v2175_v10 }
  0x87   : > { %2210 = vmatpush3.bf16.msra.mxu1 %v2207_v11  ;;  %2180 = vmatprep.subr.bf16.mxu0 %v2179_v17  ;;  %v1750_v11 = vld [vmem:[%s2914_s16 + $0x2] ss:$0 sm:$0xff] }
  0x88   : > { %2212 = vmatprep.subr.bf16.mxu1 %v2211_v18  ;;  %2013 = vmatprep.mubr.f32.mxu0 %v2852_v47 }
  0x89   : > { %2048 = vmatprep.mubr.f32.mxu1 %v2852_v47 }
  0x8a   : > { %2182 = vmatpush3.bf16.msra.mxu0 %v2179_v17 }
  0x8b   : > { %2214 = vmatpush3.bf16.msra.mxu1 %v2211_v18  ;;  %2184 = vmatprep.subr.bf16.mxu0 %v2183_v23 }
  0x8c   : > { %2216 = vmatprep.subr.bf16.mxu1 %v2215_v24 }
  0x8e   : > { %2186 = vmatpush3.bf16.msra.mxu0 %v2183_v23 }
  0x8f   : > { %2218 = vmatpush3.bf16.msra.mxu1 %v2215_v24  ;;  %2188 = vmatprep.subr.bf16.mxu0 %v2187_v29 }
  0x90   : > { %2220 = vmatprep.subr.bf16.mxu1 %v2219_v30 }
  0x92   : > { %2190 = vmatpush3.bf16.msra.mxu0 %v2187_v29  ;;  %v1769_v29 = vld [vmem:[%s2825_s15 + $0x200] sm:$0xff] }
  0x93   : > { %2222 = vmatpush3.bf16.msra.mxu1 %v2219_v30  ;;  %2192 = vmatprep.subr.bf16.mxu0 %v2191_v35  ;;  %v1770_v30 = vld [vmem:[%s2825_s15 + $0x208] sm:$0xff] }
  0x94   : > { %2224 = vmatprep.subr.bf16.mxu1 %v2223_v36  ;;  %v2239_v32 = vpack.c.bf16 %v1770_v30, %v1769_v29 }
  0x96   : > { %2194 = vmatpush3.bf16.msra.mxu0 %v2191_v35  ;;  %v1773_v35 = vld [vmem:[%s2825_s15 + $0x220] sm:$0xff] }
  0x97   : > { %2226 = vmatpush3.bf16.msra.mxu1 %v2223_v36  ;;  %2196 = vmatprep.subr.bf16.mxu0 %v2195_v41  ;;  %v1774_v36 = vld [vmem:[%s2825_s15 + $0x228] sm:$0xff] }
  0x98   : > { %2228 = vmatprep.subr.bf16.mxu1 %v2227_v42  ;;  %v2247_v37 = vpack.c.bf16 %v1774_v36, %v1773_v35 }
  0x9a   : > { %2198 = vmatpush3.bf16.msra.mxu0 %v2195_v41  ;;  %v1777_v41 = vld [vmem:[%s2825_s15 + $0x240] sm:$0xff] }
  0x9b   : > { %2230 = vmatpush3.bf16.msra.mxu1 %v2227_v42  ;;  %2200 = vmatprep.subr.bf16.mxu0 %v2199_v48  ;;  %v1778_v42 = vld [vmem:[%s2825_s15 + $0x248] sm:$0xff] }
  0x9c   : > { %2232 = vmatprep.subr.bf16.mxu1 %v2231_v49  ;;  %v2255_v43 = vpack.c.bf16 %v1778_v42, %v1777_v41 }
  0x9e   : > { %2202 = vmatpush3.bf16.msra.mxu0 %v2199_v48  ;;  %v1781_v48 = vld [vmem:[%s2825_s15 + $0x260] sm:$0xff] }
  0x9f   : > { %2234 = vmatpush3.bf16.msra.mxu1 %v2231_v49  ;;  %2204 = vmatprep.subr.bf16.mxu0 %v2203_v54  ;;  %v1782_v49 = vld [vmem:[%s2825_s15 + $0x268] sm:$0xff] }
  0xa0   : > { %2236 = vmatprep.subr.bf16.mxu1 %v2235_v55  ;;  %v2263_v50 = vpack.c.bf16 %v1782_v49, %v1781_v48 }
  0xa2   : > { %2206 = vmatpush3.bf16.msra.mxu0 %v2203_v54 }
  0xa3   : > { %2238 = vmatpush3.bf16.msra.mxu1 %v2235_v55  ;;  %2240 = vmatprep.subr.bf16.mxu0 %v2239_v32 }
  0xa5   : > { %2014 = vmatmul.mubr.f32.vlgmr.msra.gmra.mrb[2].mxu0 %v2879_v16 }
  0xa6   : > { %2049 = vmatmul.mubr.f32.vlgmr.msra.gmra.mrb[2].mxu1 %v2879_v16  ;;  %2083 = vmatprep.mubr.f32.mxu0 %v2852_v47 }
  0xa7   : > { %2242 = vmatpush3.bf16.msra.mxu0 %v2239_v32 }
  0xa8   : > { %2244 = vmatprep.subr.bf16.mxu0 %v2243_v34 }
  0xab   : > { %2246 = vmatpush3.bf16.msra.mxu0 %v2243_v34 }
  0xac   : > { %2248 = vmatprep.subr.bf16.mxu0 %v2247_v37 }
  0xaf   : > { %2250 = vmatpush3.bf16.msra.mxu0 %v2247_v37 }
  0xb0   : > { %2252 = vmatprep.subr.bf16.mxu0 %v2251_v40 }
  0xb3   : > { %2254 = vmatpush3.bf16.msra.mxu0 %v2251_v40 }
  0xb4   : > { %2256 = vmatprep.subr.bf16.mxu0 %v2255_v43 }
  0xb7   : > { %2258 = vmatpush3.bf16.msra.mxu0 %v2255_v43 }
  0xb8   : > { %2260 = vmatprep.subr.bf16.mxu0 %v2259_v46 }
  0xbb   : > { %2262 = vmatpush3.bf16.msra.mxu0 %v2259_v46 }
  0xbc   : > { %2264 = vmatprep.subr.bf16.mxu0 %v2263_v50 }
  0xbf   : > { %2266 = vmatpush3.bf16.msra.mxu0 %v2263_v50 }
  0xc0   : > { %2268 = vmatprep.subr.bf16.mxu0 %v2267_v53 }
  0xc3   : > { %2270 = vmatpush3.bf16.msra.mxu0 %v2267_v53 }
  0xc6   : > { %2084 = vmatmul.mubr.f32.vlgmr.msra.gmra.mrb[4].mxu0 %v2879_v16 }
 0x158   : > { %v1945_v58 = vpop.f32.mrb[0].mxu0 }
 0x159   : > { %v845_v60 = vadd.f32 %v1945_v58, %v1714_v56  ;;  %v1980_v61 = vpop.f32.mrb[0].mxu1  ;;  %v839_v47 = vpop.f32.mrb[1].mxu0 }
 0x15a   : > { %v945_v0 = vadd.f32 %v1980_v61, %v1732_v57  ;;  %v840_v1 = vadd.f32 %v1714_v56, %v839_v47  ;;  %v939_v2 = vpop.f32.mrb[1].mxu1 }
 0x15b   : > { %v1253_v4 = vmul.f32 %v1249_v59, %v845_v60  ;;  %v940_v5 = vadd.f32 %v1732_v57, %v939_v2 }
 0x15c   : > { %v1255_v6 = vmul.f32 %v1251_v62, %v945_v0  ;;  %v1252_v7 = vmul.f32 %v1248_v63, %v840_v1 }
 0x15d   : > { %v1254_v8 = vmul.f32 %v1250_v3, %v940_v5 }
 0x15e   : > { %v1257_v9 = vadd.f32 %v1255_v6, %v1253_v4 }
 0x15f   : > { %v1256_v10 = vadd.f32 %v1254_v8, %v1252_v7  ;;  %v1456_v8 = vld [vmem:[%s747_s12] sm:$0xff] }
 0x161   : > { %2090 = vmatprep.mubr.msk.f32.mxu1 %vm1264_vm0, %v1256_v10 }
 0x178   : > { %v2015_v13 = vpop.f32.mrb[2].mxu0 }
 0x179   : > { %v1045_v14 = vadd.f32 %v2015_v13, %v1750_v11  ;;  %v2050_v15 = vpop.f32.mrb[2].mxu1  ;;  %v1039_v17 = vpop.f32.mrb[3].mxu0 }
 0x17a   : > { %v1145_v18 = vadd.f32 %v2050_v15, %v1768_v12  ;;  %v1040_v19 = vadd.f32 %v1750_v11, %v1039_v17  ;;  %v1139_v20 = vpop.f32.mrb[3].mxu1  ;;  %v1458_v15 = vld [vmem:[%s747_s12 + $0x10] sm:$0xff]  ;;  %v1459_v17 = vld [vmem:[%s747_s12 + $0x18] sm:$0xff] }
 0x17b   : > { %v1259_v21 = vmul.f32 %v1249_v59, %v1045_v14  ;;  %v1140_v22 = vadd.f32 %v1768_v12, %v1139_v20  ;;  %v2285_v20 = vpack.c.bf16 %v1459_v17, %v1458_v15 }
 0x17c   : > { %v1261_v23 = vmul.f32 %v1251_v62, %v1145_v18  ;;  %v1258_v24 = vmul.f32 %v1248_v63, %v1040_v19 }
 0x17d   : > { %v1260_v25 = vmul.f32 %v1250_v3, %v1140_v22  ;;  %v1786_v3 = vld [vmem:[%s2914_s16 + $0x4] ss:$0 sm:$0xff]  ;;  %s737_s16 = scalar_lea.vmem [#allocation5], %s2822_s11 }
 0x17e   : > { %v1263_v26 = vadd.f32 %v1261_v23, %v1259_v21 }
 0x17f   : > { %v1262_v27 = vadd.f32 %v1260_v25, %v1258_v24  ;;  %v1796_v25 = vld [vmem:[%s3045_s4] ss:$0 sm:$0xff] (!%p1795_p5) }
 0x180   : > { %1552 = vst [vmem:[#allocation2] sm:$0xff] (!%p1795_p5), %v1796_v25  ;;  %1553 = vst [vmem:[#allocation2 + $0x8] sm:$0xff] (!%p1795_p5), %v1796_v25 }
 0x181   : > { %v2271_v28 = vpack.c.bf16 %v1263_v26, %v1262_v27 }
 0x183   : > { %2273 = vmatprep.subr.msk.bf16.mxu1 %vm2272_vm1, %v2271_v28 }
 0x184   : > { %2276 = vmatpush3.bf16.xpose.msk.msra.mxu1 %vm2272_vm1, %v2271_v28 }
 0x18b   : > { %2091 = vmatmul.mubr.msk.f32.vlgmr.msra.gmra.mrb[4].mxu1 %vm1264_vm0, %v1257_v9  ;;  %v1457_v9 = vld [vmem:[%s747_s12 + $0x8] sm:$0xff] }
 0x18c   : > { %v2281_v10 = vpack.c.bf16 %v1457_v9, %v1456_v8 }
 0x199   : > { %v2085_v2 = vpop.f32.mrb[4].mxu0 }
 0x19a   : > { %v1239_v4 = vpop.f32.mrb[5].mxu0  ;;  %v1245_v5 = vadd.f32 %v2085_v2, %v1786_v3 }
 0x19b   : > { %v1240_v6 = vadd.f32 %v1786_v3, %v1239_v4 }
 0x19d   : > { %v2277_v7 = vpack.c.bf16 %v1245_v5, %v1240_v6 }
 0x19f   : > { %2278 = vmatprep.subr.bf16.mxu1 %v2277_v7 }
 0x1a0   : > { %2280 = vmatpush3.bf16.msra.mxu1 %v2277_v7 }
 0x1a1   : > { %2282 = vmatprep.subr.bf16.mxu1 %v2281_v10 }
 0x25e   : > { %v2092_v54 = vpop.f32.mrb[4].mxu1 }
 0x25f   : > { %v1343_v55 = vpop.f32.mrb[5].mxu1  ;;  %v1356_v57 = vsel %vm1352_vm2, %v2092_v54, -inf }
 0x260   : > { %v1353_v56 = vsel %vm1352_vm2, %v1343_v55, -inf }
 0x261   : > { %1354 = vmax.xlane.f32.xlu0 %v1353_v56 }
 0x265   : > { %1357 = vmax.xlane.f32.xlu0 %v1356_v57 }
 0x2ee   : > { %v1355_v58 = vpop.xlane.xlu0 %1354 }
 0x2ef   : > { %v1359_v59 = vsub.f32 %v1343_v55, %v1355_v58 }
 0x2f1   : > { %v1361_v60 = vmul.f32 1.442695, %v1359_v59 }
 0x2f2   : > { %v1358_v61 = vpop.xlane.xlu0 %1357 }
 0x2f3   : > { %2382 = vpow2.f32 %v1361_v60  ;;  %v1360_v62 = vsub.f32 %v2092_v54, %v1358_v61 }
 0x2f5   : > { %v1363_v47 = vmul.f32 1.442695, %v1360_v62 }
 0x2f7   : > { %2384 = vpow2.f32 %v1363_v47 }
 0x2fd   : > { %v2383_v16 = vpop.eup %2382 }
 0x2fe   : > { %v1365_v63 = vsel %vm1352_vm2, %v2383_v16, 0.0 }
 0x2ff   : > { %1366 = vadd.xlane.f32.xlu1 %v1365_v63 }
 0x301   : > { %v2385_v0 = vpop.eup %2384 }
 0x302   : > { %v1368_v1 = vsel %vm1352_vm2, %v2385_v0, 0.0 }
 0x303   : > { %1369 = vadd.xlane.f32.xlu1 %v1368_v1 }
 0x38c   : > { %v1367_v11 = vpop.xlane.xlu1 %1366 }
 0x38d   : > { %2386 = vrcp.f32 %v1367_v11 }
 0x390   : > { %v1370_v12 = vpop.xlane.xlu1 %1369 }
 0x391   : > { %2388 = vrcp.f32 %v1370_v12 }
 0x397   : > { %v2387_v13 = vpop.eup %2386 }
 0x398   : > { %v1373_v14 = vmul.f32 %v2387_v13, %v2383_v16 }
 0x39a   : > { %2097 = vmatprep.mubr.msk.f32.mxu1 %vm1352_vm2, %v1373_v14 }
 0x39b   : > { %v2389_v18 = vpop.eup %2388 }
 0x39c   : > { %v1374_v19 = vmul.f32 %v2389_v18, %v2385_v0 }
 0x39e   : > { %2098 = vmatmul.mubr.msk.f32.vlgmr.msra.gmra.mrb[6].mxu1 %vm1352_vm2, %v1374_v19 }
 0x39f   : > { %2284 = vmatpush3.bf16.msra.mxu1 %v2281_v10 }
 0x3a0   : > { %2286 = vmatprep.subr.bf16.mxu1 %v2285_v20 }
 0x3a3   : > { %2288 = vmatpush3.bf16.msra.mxu1 %v2285_v20 }
 0x471   : > { %v2099_v21 = vpop.f32.mrb[6].mxu1 }
 0x472   : > { %v1447_v22 = vpop.f32.mrb[7].mxu1 }
 0x473   : > { %2108 = vmatprep.mubr.msk.f32.mxu1 %vm1264_vm0, %v1447_v22 }
 0x474   : > { %2109 = vmatmul.mubr.msk.f32.vlgmr.msra.gmra.mrb[8].mxu1 %vm1264_vm0, %v2099_v21 }
 0x542   : > { %1544 = sbr.rel (%p1795_p5) target bundleno = 1353 (0x549), region = 124 }
 0x547   : > { %v2110_v23 = vpop.f32.mrb[8].mxu1 }
 0x548   : > { %v1532_v24 = vpop.f32.mrb[9].mxu1 }
 0x549 PF: > { %v1554_v26 = vld [vmem:[#allocation2] sm:$0xff]  ;;  %v1555_v27 = vld [vmem:[#allocation2 + $0x8] sm:$0xff]  ;;  %p1797_p6 = scmp.ne.s32.totalorder %s2484_s29, 3 }
 0x54a   : > { %v1556_v28 = vadd.f32 %v1554_v26, %v1532_v24  ;;  %v1557_v29 = vadd.f32 %v2110_v23, %v1555_v27 }
 0x54b   : > { %1563 = sbr.rel (%p1797_p6) target bundleno = 1365 (0x555), region = 128 }
 0x54c   : > { %1558 = vst [vmem:[#allocation2] sm:$0xff] %v1556_v28  ;;  %1559 = vst [vmem:[#allocation2 + $0x8] sm:$0xff] %v1557_v29 }
 0x553   : > { %v1564_v30 = vld [vmem:[#allocation2] sm:$0xff]  ;;  %v1565_v31 = vld [vmem:[#allocation2 + $0x8] sm:$0xff] }
 0x554   : > { %1566 = vst [vmem:[%s737_s16] sm:$0xff] %v1564_v30  ;;  %1567 = vst [vmem:[%s737_s16 + $0x8] sm:$0xff] %v1565_v31 }
 0x555 PF: > { %s1806_s11 = sshll.u32 %s2488_s30, 8  ;;  %s1582_s1 = sshll.u32 %s737_s16, 4  ;;  %s2979_s1 = int_to_ptr.vmem [resolvable:$true] %s1582_s1 }
 0x556   : > { %s2977_s0 = scalar_lea.hbm %s3048_s7, %s1806_s11  ;;  %s3059_s15 = sand.u32 1, %s2468_s25  }
 0x557   : > { %s2983_s29 = scalar_lea.sflag [#allocation6], %s3059_s15  ;;  %s2390_s20 = scalar_lea.vmem %s2979_s1, 256 }
 0x558   : > { %p2391_p7 = scmp.ne.s32.totalorder %s2979_s1, %s2390_s20  ;;  %s2502_s30 = smov [#allocation5]  }
 0x559   : > { %s2394_s12 = sshll.u32 %s2502_s30, 4  ;;  %s2395_s12 = int_to_ptr.vmem [resolvable:$false] %s2394_s12 }
 0x55a   : > { %p2392_p8 = pnand %p2391_p7, %p2624_p10  ;;  %s2396_s18 = scalar_lea.vmem %s2395_s12, 512 }
 0x55b   : > { %p2397_p11 = scmp.lt.s32.totalorder %s2979_s1, %s2395_s12  ;;  %p2398_p13 = scmp.lt.s32.totalorder %s2396_s18, %s2390_s20 }
 0x55c   : > { %p2393_p9 = pneg %p2392_p8 }
 0x55d   : > { %p2399_p0 = por %p2398_p13, %p2397_p11 }
 0x55f   : > { %p2400_p1 = pnand %p2399_p0, %p2393_p9 }
 0x561   : > { %2403 = shalt.err (!%p2400_p1)
}
 0x562   : > { %s2404_s16 = scalar_lea.hbm %s2977_s0, 256  ;;  %s2408_s17 = scalar_lea.hbm %s3048_s7, 512 }
 0x563   : > { %p2405_p2 = scmp.ne.s32.totalorder %s2977_s0, %s2404_s16  ;;  %p2409_p5 = scmp.lt.u32.totalorder %s2977_s0, %s3048_s7 }
 0x564   : > { %p2410_p6 = scmp.lt.u32.totalorder %s2408_s17, %s2404_s16  ;;  %p2412_p8 = scmp.lt.u32.totalorder %s2404_s16, %s2977_s0 }
 0x565   : > { %p2406_p3 = pnand %p2405_p2, %p2624_p10 }
 0x566   : > { %p2411_p7 = por %p2410_p6, %p2409_p5 }
 0x567   : > { %p2407_p4 = pneg %p2406_p3 }
 0x568   : > { %p2413_p9 = por %p2412_p8, %p2411_p7 }
 0x56a   : > { %p2414_p11 = pnand %p2413_p9, %p2407_p4 }
 0x56c   : > { %2417 = shalt.err (!%p2414_p11)
}
 0x56d   : > { %s2503_s20 = smov 128   ;;  %s2504_s30 = smov 8  }
 0x56e   : > { %2293 = dma.vmem_to_hbm [thread:$0]  (%p2624_p10), %s2979_s1, 256, %s2977_s0, %s2983_s29, %s2503_s20, %s2503_s20, %s2504_s30  }
 0x56f PF: > { %p2299_p13 = scmp.ge.s32.totalorder %s2500_s10, 2  ;;  %s1597_s12 = sand.u32 1, %s2464_s24  }
 0x570   : > { %s1598_s18 = scalar_lea.sflag [#allocation6], %s1597_s12 }
 0x571   : > { %p2296_p0 = pnand %p2299_p13, %p2631_p12 }
 0x573   : > { %2459 = dma.done.wait (!%p2296_p0), %s1598_s18, 256  }
 0x574   : > { %2461 = vsyncadd (!%p2296_p0), %s1598_s18, 4294967040  ;;  %s20_s10 = sadd.s32 1, %s2500_s10   ;;  %s3060_s21 = sld [smem:[#allocation8_spill]] }
 0x575   : > { %p17_p1 = scmp.ge.s32.totalorder %s20_s10, 10   ;;  %s3061_s24 = smov %s2468_s25 }
 0x576   : > { %s3062_s25 = smov %s2472_s26  ;;  %s3063_s26 = smov %s2629_s22 }
 0x577   : > { %s3064_s27 = smov %s2480_s28  ;;  %s3065_s28 = smov %s2618_s19 }
 0x578   : > { %s3066_s29 = smov %s2492_s8  ;;  %s3067_s30 = smov %s2496_s9 }
 0x579   : > { %s3068_s8 = smov %s3071_s13  ;;  %19 = sbr.rel (!%p17_p1) target bundleno = 9 (0x9), region = 190 }
 0x57a   : > { %s3069_s9 = smov %s3060_s21 }
 0x580   :  { %1603 = vsyncpa [#allocation6], 1 }
 0x581   :  { %1605 = vsyncpa [#allocation6 + $0x1], 1 }

</bundles_post_ra>
